<compile_context>
chip_gen: v6e
topology: v6e:2x2x1
jax: 0.10.0
libtpu: 0.0.40
codegen_flags: <defaults>
</compile_context>

<pallas_src>
import math

import jax
import jax.numpy as jnp
from jax.experimental import pallas as pl
from jax.experimental.pallas import tpu as pltpu

# Hyperparameters (the PyTorch module closes over module-level globals).
N_EMBD = 32       # n_embd
BLOCK_SIZE = 8    # block_size (== T used in the example)
HEAD_SIZE = 16    # head_size
DROPOUT = 0.0     # dropout prob; eval-mode / p=0 -> identity


def head_kernel(x_ref, w_ref, o_ref):
    # x_ref: (NB, T, C)   w_ref: (C, 3H) = [Wk | Wq | Wv]   o_ref: (NB, T, H)
    x = x_ref[...]                      # (NB, T, C)  compute dtype (bf16/f32)
    w = w_ref[...]                      # (C, 3H)

    nb, t, c = x.shape
    h = o_ref.shape[-1]

    # Fused K/Q/V projection as ONE 2-D MXU matmul.  Merging the leading dims
    # (NB, T, C) -> (NB*T, C) is layout-preserving (minor dim unchanged, T == 8
    # sublanes per batch element), and fills MXU rows instead of NB tiny
    # 8-row pushes.
    x2 = x.reshape(nb * t, c)
    kqv = jax.lax.dot_general(
        x2, w,
        dimension_numbers=(((1,), (0,)), ((), ())),
        preferred_element_type=jnp.float32)            # (NB*T, 3H) f32
    kqv = kqv.reshape(nb, t, 3 * h)                    # split leading dim back
    k = kqv[..., 0:h]
    q = kqv[..., h:2 * h]
    v = kqv[..., 2 * h:3 * h]

    # Attention scores.  NOTE: the PyTorch module scales by C**0.5 (C = n_embd),
    # not head_size**0.5 — we match the module.
    scale = 1.0 / math.sqrt(c)
    wei = jnp.einsum('bqd,bkd->bqk', q, k,
                     preferred_element_type=jnp.float32) * scale   # (NB, T, T)

    # Causal mask from 2-D (T, T) iotas, broadcast over the batch dim.
    rows = jax.lax.broadcasted_iota(jnp.int32, (t, t), 0)
    cols = jax.lax.broadcasted_iota(jnp.int32, (t, t), 1)
    causal = rows >= cols                               # (T, T) bool
    wei = jnp.where(causal[None, :, :], wei, -jnp.inf)

    # Numerically stable softmax along the last dim (all f32); reciprocal on
    # the EUP.  (Diagonal is always unmasked, so no NaN rows.)
    m = jnp.max(wei, axis=-1, keepdims=True)
    e = jnp.exp(wei - m)
    denom = jnp.sum(e, axis=-1, keepdims=True)
    p = e * pl.reciprocal(denom, approx=True)

    # Dropout is identity (eval mode / p = 0.0).

    out = jnp.einsum('bqk,bkd->bqd', p, v,
                     preferred_element_type=jnp.float32)           # (NB, T, H)
    o_ref[...] = out.astype(o_ref.dtype)


def _pick_batch_block(batch, t, c, h, in_itemsize,
                      vmem_budget_bytes=8 * 1024 * 1024,
                      target_parallel_steps=2):
    """VMEM-derived batch block (no magic cap).

    Per-batch-element VMEM estimate: double-buffered x block plus f32
    temporaries (kqv, wei, mask, out), each lane-padded to 128.  Even a block
    of several hundred batch elements is only a few MiB — well inside the
    default scoped VMEM limit on v5e/v6e and v7x's 64 MiB physical VMEM, so
    sizing is driven purely by step-count amortization.
    """
    def lanes(n):
        return -(-n // 128) * 128

    per_elem = 2 * t * lanes(c) * in_itemsize                       # x, 2 bufs
    per_elem += t * (lanes(3 * h) + 2 * lanes(t) + lanes(h)) * 4    # f32 temps
    cap = max(1, int(vmem_budget_bytes // per_elem))

    if batch <= cap:
        # Whole batch fits comfortably.  If it is large enough to split across
        # v7x's two TensorCores, make exactly `target_parallel_steps` fat
        # blocks; otherwise one step (per-step overhead dominates at tiny B,
        # and on 1-TC v5e/v6e fewer steps is always better).
        if batch >= 2 * target_parallel_steps * 8:
            return pl.cdiv(batch, target_parallel_steps)
        return batch

    # VMEM-bound: as few steps as possible, rounded so the step count is a
    # multiple of target_parallel_steps (keeps both v7x cores busy).
    steps = pl.cdiv(batch, cap)
    steps = pl.cdiv(steps, target_parallel_steps) * target_parallel_steps
    return pl.cdiv(batch, steps)


def pack_head_weights(wk, wq, wv):
    """Pre-concatenate the three projection matrices to (C, 3H) = [Wk|Wq|Wv].

    Do this once at parameter-packing time, not per forward call."""
    return jnp.concatenate([wk, wq, wv], axis=1)


def head_forward(x, w_kqv, *, batch_block=None, compute_dtype=jnp.bfloat16):
    """Forward pass of `Head`.  x: (B, T, C); w_kqv: (C, 3H) packed weights."""
    B, T, C = x.shape
    H = w_kqv.shape[1] // 3
    out_dtype = x.dtype

    # bf16 inputs halve HBM->VMEM DMA bytes for the streamed x (dominant
    # traffic at large B, biggest effect on v5e); accumulation and softmax
    # remain f32 inside the kernel.
    x_c = x.astype(compute_dtype)
    w_c = w_kqv.astype(compute_dtype)

    if batch_block is None:
        batch_block = _pick_batch_block(
            B, T, C, H, jnp.dtype(compute_dtype).itemsize)
    batch_block = max(1, min(batch_block, B))

    num_steps = pl.cdiv(B, batch_block)
    B_pad = num_steps * batch_block
    if B_pad != B:
        # Masked tail via zero-padding in the wrapper; padded rows are sliced
        # off below (softmax on the padded rows is finite, just discarded).
        x_c = jnp.pad(x_c, ((0, B_pad - B), (0, 0), (0, 0)))

    x_spec_kwargs = {}
    if num_steps > 4:
        # Deepen input pipelining only when there are still many steps; VMEM
        # cost is KB-scale.
        x_spec_kwargs = dict(pipeline_mode=pl.Buffered(3))
    x_spec = pl.BlockSpec((batch_block, T, C), lambda b: (b, 0, 0),
                          **x_spec_kwargs)

    out = pl.pallas_call(
        head_kernel,
        out_shape=jax.ShapeDtypeStruct((B_pad, T, H), out_dtype),
        grid_spec=pltpu.PrefetchScalarGridSpec(
            num_scalar_prefetch=0,
            grid=(num_steps,),
            in_specs=[
                x_spec,
                pl.BlockSpec((C, 3 * H), lambda b: (0, 0)),
            ],
            out_specs=pl.BlockSpec((batch_block, T, H), lambda b: (b, 0, 0)),
        ),
        compiler_params=pltpu.CompilerParams(
            dimension_semantics=("parallel",)),
    )(x_c, w_c)

    if B_pad != B:
        out = out[:B]
    return out


def reference_forward(x, wk, wq, wv):
    B, T, C = x.shape
    k = x @ wk
    q = x @ wq
    v = x @ wv
    wei = (q @ jnp.swapaxes(k, -2, -1)) / math.sqrt(C)
    mask = jnp.tril(jnp.ones((T, T), dtype=bool))
    wei = jnp.where(mask, wei, -jnp.inf)
    wei = jax.nn.softmax(wei, axis=-1)
    return wei @ v


if __name__ == "__main__":
    key = jax.random.PRNGKey(0)
    kx, kk, kq, kv = jax.random.split(key, 4)

    B, T = 2, BLOCK_SIZE
    x = jax.random.normal(kx, (B, T, N_EMBD), dtype=jnp.float32)

    # Deterministic nn.Linear-like init (Kaiming-uniform-ish bound), stored as
    # (in_features, out_features) so the kernel computes x @ W.
    bound = 1.0 / math.sqrt(N_EMBD)
    wk = jax.random.uniform(kk, (N_EMBD, HEAD_SIZE), jnp.float32, -bound, bound)
    wq = jax.random.uniform(kq, (N_EMBD, HEAD_SIZE), jnp.float32, -bound, bound)
    wv = jax.random.uniform(kv, (N_EMBD, HEAD_SIZE), jnp.float32, -bound, bound)

    w_kqv = pack_head_weights(wk, wq, wv)   # hoisted: pack once, reuse per call

    out = head_forward(x, w_kqv)
    jax.block_until_ready(out)

    ref = reference_forward(x, wk, wq, wv)
    assert out.shape == (B, T, HEAD_SIZE), out.shape
    # Tolerance covers bf16 MXU inputs (f32 accumulation) and the approximate
    # EUP reciprocal in the softmax denominator; pass compute_dtype=jnp.float32
    # for tighter agreement with the f32 PyTorch module.
    assert jnp.allclose(out, ref, atol=3e-2, rtol=3e-2), "mismatch vs reference"

    print("KERNEL_OK")
</pallas_src>

<mosaic_0001>
module attributes {stable_mosaic.version = 11 : i64} {
  func.func @head_kernel(%arg0: i32, %arg1: memref<2x8x32xbf16, #tpu.memory_space<vmem>>, %arg2: memref<32x48xbf16, #tpu.memory_space<vmem>>, %arg3: memref<2x8x16xf32, #tpu.memory_space<vmem>>) attributes {dimension_semantics = [#tpu.dimension_semantics<parallel>], iteration_bounds = array<i64: 1>, scalar_prefetch = 0 : i64, scratch_operands = 0 : i64, tpu.core_type = #tpu.core_type<tc>, window_params = [{transform_indices = @transform_0, window_bounds = array<i64: 2, 8, 32>}, {pipeline_mode = #tpu.pipeline_mode<synchronous>, transform_indices = @transform_1, window_bounds = array<i64: 32, 48>}, {transform_indices = @transform_2, window_bounds = array<i64: 2, 8, 16>}]} {
    %c0 = arith.constant 0 : index
    %c0_0 = arith.constant 0 : index
    %c0_1 = arith.constant 0 : index
    %0 = vector.load %arg1[%c0, %c0_0, %c0_1] : memref<2x8x32xbf16, #tpu.memory_space<vmem>>, vector<2x8x32xbf16>
    %c0_2 = arith.constant 0 : index
    %c0_3 = arith.constant 0 : index
    %1 = vector.load %arg2[%c0_2, %c0_3] : memref<32x48xbf16, #tpu.memory_space<vmem>>, vector<32x48xbf16>
    %2 = vector.shape_cast %0 : vector<2x8x32xbf16> to vector<16x32xbf16>
    %cst = arith.constant dense<0.000000e+00> : vector<16x48xf32>
    %3 = tpu.matmul %2, %1, %cst {dimension_numbers = #tpu.dot_dimension_numbers<[1], [0], [0], [1], [0, 0, 1, 1], [], []>} : vector<16x32xbf16>, vector<32x48xbf16>, vector<16x48xf32> -> vector<16x48xf32>
    %4 = vector.shape_cast %3 : vector<16x48xf32> to vector<2x8x48xf32>
    %5 = vector.extract_strided_slice %4 {offsets = [0, 0, 0], sizes = [2, 8, 16], strides = [1, 1, 1]} : vector<2x8x48xf32> to vector<2x8x16xf32>
    %6 = vector.extract_strided_slice %4 {offsets = [0, 0, 16], sizes = [2, 8, 16], strides = [1, 1, 1]} : vector<2x8x48xf32> to vector<2x8x16xf32>
    %7 = vector.extract_strided_slice %4 {offsets = [0, 0, 32], sizes = [2, 8, 16], strides = [1, 1, 1]} : vector<2x8x48xf32> to vector<2x8x16xf32>
    "tpu.trace_start"() <{level = 10 : i32, message = "bqd,bkd->bqk"}> : () -> ()
    %cst_4 = arith.constant dense<0.000000e+00> : vector<2x8x8xf32>
    %8 = tpu.matmul %6, %5, %cst_4 {dimension_numbers = #tpu.dot_dimension_numbers<[2], [2], [1], [1], [0, 0, 0, 1, 1, 1], [0], [0]>} : vector<2x8x16xf32>, vector<2x8x16xf32>, vector<2x8x8xf32> -> vector<2x8x8xf32>
    "tpu.trace_stop"() : () -> ()
    %cst_5 = arith.constant 0.176776692 : f32
    %9 = vector.broadcast %cst_5 : f32 to vector<2x8x8xf32>
    %10 = arith.mulf %8, %9 : vector<2x8x8xf32>
    %11 = tpu.iota {dimensions = array<i32: 0>} : vector<8x8xi32>
    %12 = tpu.iota {dimensions = array<i32: 1>} : vector<8x8xi32>
    %13 = arith.cmpi sge, %11, %12 : vector<8x8xi32>
    %14 = vector.shape_cast %13 : vector<8x8xi1> to vector<1x8x8xi1>
    %cst_6 = arith.constant 0xFF800000 : f32
    %15 = vector.shape_cast %14 : vector<1x8x8xi1> to vector<1x8x8xi1>
    %16 = vector.broadcast %15 : vector<1x8x8xi1> to vector<2x8x8xi1>
    %17 = vector.broadcast %cst_6 : f32 to vector<2x8x8xf32>
    %18 = arith.select %16, %10, %17 : vector<2x8x8xi1>, vector<2x8x8xf32>
    %cst_7 = arith.constant dense<0xFF800000> : vector<2x8xf32>
    %19 = vector.multi_reduction <maximumf>, %18, %cst_7 [2] : vector<2x8x8xf32> to vector<2x8xf32>
    %20 = vector.shape_cast %19 : vector<2x8xf32> to vector<2x8x1xf32>
    %21 = vector.broadcast %20 : vector<2x8x1xf32> to vector<2x8x8xf32>
    %22 = arith.subf %18, %21 : vector<2x8x8xf32>
    %23 = math.exp %22 : vector<2x8x8xf32>
    %cst_8 = arith.constant dense<0.000000e+00> : vector<2x8xf32>
    %24 = vector.multi_reduction <add>, %23, %cst_8 [2] : vector<2x8x8xf32> to vector<2x8xf32>
    %25 = vector.shape_cast %24 : vector<2x8xf32> to vector<2x8x1xf32>
    %26 = tpu.reciprocal %25 {approx = true} : vector<2x8x1xf32> -> vector<2x8x1xf32>
    %27 = vector.broadcast %26 : vector<2x8x1xf32> to vector<2x8x8xf32>
    %28 = arith.mulf %23, %27 : vector<2x8x8xf32>
    "tpu.trace_start"() <{level = 10 : i32, message = "bqk,bkd->bqd"}> : () -> ()
    %cst_9 = arith.constant dense<0.000000e+00> : vector<2x8x16xf32>
    %29 = tpu.matmul %28, %7, %cst_9 {dimension_numbers = #tpu.dot_dimension_numbers<[2], [1], [1], [2], [0, 0, 0, 1, 1, 2], [0], [0]>} : vector<2x8x8xf32>, vector<2x8x16xf32>, vector<2x8x16xf32> -> vector<2x8x16xf32>
    "tpu.trace_stop"() : () -> ()
    %c0_10 = arith.constant 0 : index
    %c0_11 = arith.constant 0 : index
    %c0_12 = arith.constant 0 : index
    %30 = vector.load %arg3[%c0_10, %c0_11, %c0_12] : memref<2x8x16xf32, #tpu.memory_space<vmem>>, vector<2x8x16xf32>
    tpu.vector_store %arg3[%c0_10, %c0_11, %c0_12], %29 {strides = array<i32>} : memref<2x8x16xf32, #tpu.memory_space<vmem>>, vector<2x8x16xf32>,
    return
  }
  func.func @transform_0(%arg0: i32) -> (i32, i32, i32) {
    %c0_i32 = arith.constant 0 : i32
    %c0_i32_0 = arith.constant 0 : i32
    %c0_i32_1 = arith.constant 0 : i32
    return %arg0, %c0_i32, %c0_i32_0 : i32, i32, i32
  }
  func.func @transform_1(%arg0: i32) -> (i32, i32) {
    %c0_i32 = arith.constant 0 : i32
    %c0_i32_0 = arith.constant 0 : i32
    %c0_i32_1 = arith.constant 0 : i32
    return %c0_i32, %c0_i32_0 : i32, i32
  }
  func.func @transform_2(%arg0: i32) -> (i32, i32, i32) {
    %c0_i32 = arith.constant 0 : i32
    %c0_i32_0 = arith.constant 0 : i32
    %c0_i32_1 = arith.constant 0 : i32
    return %arg0, %c0_i32, %c0_i32_0 : i32, i32, i32
  }
}

</mosaic_0001>

<bundles_post_ra>
// kernel: tpu_custom_call.1
= control target key start
LH: loop header
LB: loop body
LE: loop exit
PB: predicated region body
PF: predicated region fallthrough
CT: control target
= control target key end

     0   :  { %7 = vsyncpa [#allocation3], 0  ;;  %s659_s0 = inlined_call_operand.hbm [shape: bf16[2,8,32], index: 0, kind: input, shape index: {}]   ;;  %s660_s1 = inlined_call_operand.hbm [shape: bf16[32,48], index: 1, kind: input, shape index: {}]   ;;  %s661_s2 = inlined_call_operand.hbm [shape: f32[2,8,16], index: 2, kind: output, shape index: {}]  }
   0x1   :  { %8 = vsyncpa [#allocation6], 0 }
   0x2   :  { %9 = vsyncpa [#allocation4], 0  ;;  %s607_s9 = smov [#allocation2]  }
   0x3   :  { %s15_s10 = sshll.u32 %s607_s9, 4  ;;  %s16_s10 = int_to_ptr.vmem [resolvable:$true] %s15_s10 }
   0x4   :  { %s549_s11 = scalar_lea.vmem %s16_s10, 128  ;;  %p554_p1 = scmp.lt.s32.totalorder %s16_s10, %s16_s10 }
   0x5   :  { %p550_p0 = scmp.ne.s32.totalorder %s16_s10, %s549_s11  ;;  %p555_p2 = scmp.lt.s32.totalorder %s549_s11, %s549_s11 }
   0x7   :  { %p556_p3 = por %p555_p2, %p554_p1 }
   0x9   :  { %p557_p4 = pnand %p556_p3, %p550_p0 }
   0xb   :  { %560 = shalt.err (!%p557_p4)
}
   0xc   :  { %s608_s12 = smov 64   ;;  %s609_s13 = smov 4  }
   0xd   :  { %21 = dma.hbm_to_vmem [thread:$0]  %s659_s0, 128, %s16_s10, [#allocation3], %s608_s12, %s608_s12, %s609_s13  }
   0xe   :  { %s610_s16 = smov [#allocation5]  }
   0xf   :  { %s27_s17 = sshll.u32 %s610_s16, 4  ;;  %s28_s17 = int_to_ptr.vmem [resolvable:$true] %s27_s17 }
  0x10   :  { %s569_s18 = scalar_lea.vmem %s28_s17, 256  ;;  %p574_p6 = scmp.lt.s32.totalorder %s28_s17, %s28_s17 }
  0x11   :  { %p570_p5 = scmp.ne.s32.totalorder %s28_s17, %s569_s18  ;;  %p575_p7 = scmp.lt.s32.totalorder %s569_s18, %s569_s18 }
  0x13   :  { %p576_p8 = por %p575_p7, %p574_p6 }
  0x15   :  { %p577_p9 = pnand %p576_p8, %p570_p5 }
  0x17   :  { %580 = shalt.err (!%p577_p9)
}
  0x18   :  { %33 = dma.hbm_to_vmem [thread:$0]  %s660_s1, 256, %s28_s17, [#allocation6], %s608_s12, %s608_s12, %s609_s13  }
  0x19   :  { %601 = dma.done.wait [#allocation3], 128  }
  0x1a   :  { %602 = vsyncadd [#allocation3], 4294967168 }
  0x1b   :  { %603 = dma.done.wait [#allocation6], 256  }
  0x1c   :  { %604 = vsyncadd [#allocation6], 4294967040  ;;  %v611_v0 = vmov 0.0   ;;  %vm612_vm0 = vmmov 0   ;;  %v530_v1 = vld [vmem:[#allocation5 + $0x8] sm:$0xff]   ;;  %v531_v2 = vld [vmem:[#allocation5] sm:$0xff]   ;;  %v266_v10 = vlaneseq }
  0x1d   :  { %491 = vmatprep.subr.bf16.mxu0 %v611_v0  ;;  %495 = vmatprep.mubr.msk.bf16.mxu0 %vm612_vm0, %v611_v0  ;;  %v532_v3 = vld [vmem:[#allocation2] sm:$0xff]   ;;  %vm64_vm1 = vcmask 261120   ;;  %vm112_vm2 = vcmask 130048   ;;  %s613_s0 = smov 112   ;;  %vm275_vm4 = vcmask 64512   ;;  %s614_s1 = smov 96  }
  0x1e   :  { %499 = vmatprep.subr.mxu1 %v611_v0  ;;  %501 = vmatprep.mubr.msk.f32.mxu1 %vm612_vm0, %v611_v0  ;;  %v267_v11 = vshrl.u32 %v266_v10, 7  ;;  %v269_v12 = vand.u32 127, %v266_v10  ;;  %s615_s21 = smov [#allocation7]  }
  0x1f   :  { %492 = vmatpush3.bf16.msra.mxu0 %v530_v1  ;;  %s457_s22 = sshll.u32 %s615_s21, 4  ;;  %s458_s22 = int_to_ptr.vmem [resolvable:$true] %s457_s22 }
  0x20   :  { %493 = vmatprep.subr.bf16.mxu0 %v611_v0  ;;  %vm270_vm3 = vcmp.ge.s32.totalorder %v267_v11, %v269_v12  ;;  %s581_s23 = scalar_lea.vmem %s458_s22, 256  ;;  %p586_p11 = scmp.lt.s32.totalorder %s458_s22, %s458_s22 }
  0x21   :  { %p582_p10 = scmp.ne.s32.totalorder %s458_s22, %s581_s23  ;;  %p587_p12 = scmp.lt.s32.totalorder %s581_s23, %s581_s23 }
  0x23   :  { %494 = vmatpush3.bf16.msra.mxu0 %v531_v2  ;;  %p588_p13 = por %p587_p12, %p586_p11 }
  0x24   :  { %514 = vmatprep.subr.mxu0 %v611_v0 }
  0x25   :  { %p589_p0 = pnand %p588_p13, %p582_p10 }
  0x26   :  { %496 = vmatmul.mubr.msk.bf16.vlgmr.msra.gmra.mxu0 %vm64_vm1, %v532_v3 }
  0x27   :  { %516 = vmatprep.mubr.msk.f32.mxu0 %vm612_vm0, %v611_v0 }
  0xe6   :  { %v102_v4 = vpop.f32.mrf.mxu0 }
  0xe7   :  { %110 = vrot.lane.b32.xlu0 %v102_v4, %s613_s0  ;;  %500 = vmatpush3.xpose.msk.msra.mxu1 %vm112_vm2, %v102_v4 }
  0xe8   :  { %v497_v5 = vpop.f32.mrf.mxu0  ;;  %504 = vmatprep.subr.mxu1 %v611_v0 }
  0xea   :  { %v105_v6 = vpop.f32.mrf.mxu0 }
  0xeb   :  { %188 = vrot.lane.b32.xlu0 %v105_v6, %s613_s0 }
  0xec   :  { %v498_v7 = vpop.f32.mrf.mxu0 }
 0x159   :  { %v111_v8 = vpop.permute.xlu0 %110 }
 0x15a   :  { %502 = vmatmul.mubr.msk.f32.vlgmr.msra.gmra.mxu1 %vm112_vm2, %v111_v8 }
 0x15b   :  { %505 = vmatpush3.xpose.msk.msra.mxu1 %vm112_vm2, %v105_v6  ;;  %506 = vmatprep.mubr.msk.f32.mxu1 %vm612_vm0, %v611_v0 }
 0x15c   :  { %509 = vmatprep.subr.mxu1 %v611_v0 }
 0x15d   :  { %v189_v9 = vpop.permute.xlu0 %188 }
 0x15e   :  { %507 = vmatmul.mubr.msk.f32.vlgmr.msra.gmra.mxu1 %vm112_vm2, %v189_v9 }
 0x15f   :  { %511 = vmatprep.mubr.msk.f32.mxu1 %vm612_vm0, %v611_v0 }
 0x21a   :  { %v183_v13 = vpop.f32.mrf.mxu1 }
 0x21b   :  { %v264_v14 = vmul.f32 0.17677669, %v183_v13 }
 0x21c   :  { %v503_v15 = vpop.f32.mrf.mxu1 }
 0x21d   :  { %v273_v16 = vsel %vm270_vm3, %v264_v14, -inf }
 0x21e   :  { %v260_v17 = vpop.f32.mrf.mxu1  ;;  %v276_v18 = vsel %vm275_vm4, %v273_v16, -inf }
 0x21f   :  { %v265_v19 = vmul.f32 0.17677669, %v260_v17  ;;  %277 = vmax.xlane.f32.xlu1 %v276_v18 }
 0x220   :  { %v508_v20 = vpop.f32.mrf.mxu1 }
 0x221   :  { %v274_v21 = vsel %vm270_vm3, %v265_v19, -inf }
 0x222   :  { %v279_v22 = vsel %vm275_vm4, %v274_v21, -inf }
 0x223   :  { %280 = vmax.xlane.f32.xlu1 %v279_v22 }
 0x234   :  { %298 = vrot.lane.b32.xlu1 %v102_v4, %s614_s1 }
 0x2a8   :  { %v278_v23 = vpop.xlane.xlu1 %277 }
 0x2a9   :  { %v282_v24 = vsub.f32 %v273_v16, %v278_v23 }
 0x2ab   :  { %v284_v25 = vmul.f32 1.442695, %v282_v24 }
 0x2ac   :  { %v281_v26 = vpop.xlane.xlu1 %280 }
 0x2ad   :  { %533 = vpow2.f32 %v284_v25  ;;  %v283_v27 = vsub.f32 %v274_v21, %v281_v26 }
 0x2af   :  { %v286_v28 = vmul.f32 1.442695, %v283_v27 }
 0x2b0   :  { %v299_v29 = vpop.permute.xlu1 %298 }
 0x2b1   :  { %535 = vpow2.f32 %v286_v28  ;;  %510 = vmatpush3.msra.mxu1 %v299_v29 }
 0x2ba   :  { %v534_v30 = vpop.eup %533 }
 0x2bb   :  { %v288_v31 = vsel %vm275_vm4, %v534_v30, 0.0 }
 0x2bc   :  { %289 = vadd.xlane.f32.xlu0 %v288_v31 }
 0x2be   :  { %v536_v32 = vpop.eup %535 }
 0x2bf   :  { %v291_v33 = vsel %vm275_vm4, %v536_v32, 0.0 }
 0x2c0   :  { %292 = vadd.xlane.f32.xlu1 %v291_v33 }
 0x2d1   :  { %374 = vrot.lane.b32.xlu1 %v105_v6, %s614_s1 }
 0x345   :  { %v290_v34 = vpop.xlane.xlu0 %289 }
 0x346   :  { %537 = vrcp.f32 %v290_v34 }
 0x349   :  { %v293_v35 = vpop.xlane.xlu1 %292 }
 0x34a   :  { %539 = vrcp.f32 %v293_v35 }
 0x34d   :  { %v375_v36 = vpop.permute.xlu1 %374 }
 0x34e   :  { %515 = vmatpush3.msra.mxu0 %v375_v36 }
 0x353   :  { %v538_v37 = vpop.eup %537 }
 0x354   :  { %v296_v38 = vmul.f32 %v538_v37, %v534_v30 }
 0x356   :  { %512 = vmatmul.mubr.msk.f32.vlgmr.msra.gmra.mxu1 %vm275_vm4, %v296_v38 }
 0x357   :  { %v540_v39 = vpop.eup %539 }
 0x358   :  { %v297_v40 = vmul.f32 %v540_v39, %v536_v32 }
 0x35a   :  { %517 = vmatmul.mubr.msk.f32.vlgmr.msra.gmra.mxu0 %vm275_vm4, %v297_v40 }
 0x416   :  { %v370_v41 = vpop.f32.mrf.mxu1 }
 0x417   :  { %450 = vst.msk [vmem:[#allocation7] sm:$0xff] %vm112_vm2, %v370_v41 }
 0x418   :  { %v513_v42 = vpop.f32.mrf.mxu1 }
 0x41a   :  { %v446_v43 = vpop.f32.mrf.mxu0 }
 0x41b   :  { %451 = vst.msk [vmem:[#allocation7 + $0x8] sm:$0xff] %vm112_vm2, %v446_v43 }
 0x41c   :  { %v518_v44 = vpop.f32.mrf.mxu0 }
 0x41d   :  { %592 = shalt.err (!%p589_p0)
}
 0x41e   :  { %s616_s24 = smov 128   ;;  %s617_s25 = smov 8  }
 0x41f   :  { %463 = dma.vmem_to_hbm [thread:$0]  %s458_s22, 256, %s661_s2, [#allocation4], %s616_s24, %s616_s24, %s617_s25  }
 0x420   :  { %605 = dma.done.wait [#allocation4], 256  }
 0x421   :  { %606 = vsyncadd [#allocation4], 4294967040 }
 0x422   :  { %467 = vsyncpa [#allocation3], 1 }
 0x423   :  { %468 = vsyncpa [#allocation6], 1 }
 0x424   :  { %469 = vsyncpa [#allocation4], 1 }

</bundles_post_ra>
